<compile_context>
chip_gen: v7x
topology: tpu7x:2x2x1
jax: 0.10.0
libtpu: 0.0.40
codegen_flags: <defaults>
</compile_context>

<pallas_src>
import jax
import jax.numpy as jnp
from jax.experimental import pallas as pl
from jax.experimental.pallas import tpu as pltpu

EPS = 1e-5


def _build_banded(w, W):
    """w: [3, 3, Cin, Cout] (HWIO) -> B: [3, W*Cin, W*Cout] banded per-kh matrices.

    B[kh][wi*Cin+ci, wo*Cout+co] = w[kh, wi-wo+1, ci, co] if wi-wo in {-1, 0, 1} else 0,
    i.e. one image row (length W*Cin) times B[kh] performs the full kw sweep of the 3x3
    conv (with zero padding at the W edges) for that kh tap.
    """
    KH, KW, Cin, Cout = w.shape
    # sel[kw, wi, wo] = 1 iff wi == wo + kw - 1  (shifted identities)
    sel = jnp.stack([jnp.eye(W, W, k=1 - kw, dtype=w.dtype) for kw in range(KW)])
    B = jnp.einsum("kio,hkcd->hicod", sel, w)          # [KH, wi, Cin, wo, Cout]
    return B.reshape(KH, W * Cin, W * Cout)


def basic_block30(x, w1, g1, b1, w2, g2, b2):
    """x: [N, H, W, C] f32 (NHWC); w*: [3, 3, C, C] (HWIO); g*/b*: [C]."""
    N, H, W, C = x.shape
    assert w1.shape == (3, 3, C, C) and w2.shape == (3, 3, C, C), \
        "BasicBlock (expansion=1, no downsample) requires inplanes == planes"
    WC = W * C
    M = N * H
    inv_cnt = 1.0 / (N * H * W)

    # ---- host-side layout / weight plumbing (tiny, done once) ----
    xr = x.reshape(M, WC)                                # lane-dense activation (pure reshape)
    B1 = _build_banded(w1, W)                            # (3, WC, WC)
    B2 = _build_banded(w2, W)
    P = jnp.tile(jnp.eye(C, dtype=x.dtype), (W, W))      # (WC, WC): per-channel fold + lane broadcast
    # kh row-shift matrices with image-boundary masking baked in (zero across image edges)
    r = jnp.arange(M)
    sdn = jnp.eye(M, M, k=-1, dtype=x.dtype) * ((r % H) != 0).astype(x.dtype)[:, None]
    sup = jnp.eye(M, M, k=1, dtype=x.dtype) * ((r % H) != (H - 1)).astype(x.dtype)[:, None]
    # per-channel BN affine params tiled onto the W*C lane layout
    g1w = jnp.tile(g1.reshape(-1), W).reshape(1, WC)
    b1w = jnp.tile(b1.reshape(-1), W).reshape(1, WC)
    g2w = jnp.tile(g2.reshape(-1), W).reshape(1, WC)
    b2w = jnp.tile(b2.reshape(-1), W).reshape(1, WC)

    def kernel(x_ref, b1_ref, b2_ref, sdn_ref, sup_ref, p_ref,
               g1_ref, be1_ref, g2_ref, be2_ref, out_ref):
        xv = x_ref[...]                                  # (M, WC) f32, lane-dense
        s_dn = sdn_ref[...]                              # (M, M)
        s_up = sup_ref[...]
        p = p_ref[...]                                   # (WC, WC)

        def conv3x3(act, b_ref):
            # kw taps + W-edge zero pad are inside the banded (WC, WC) matrices;
            # kh taps = tiny shift-matrix matmuls (row shift with image-boundary zeroing).
            t0 = jnp.dot(act, b_ref[0], preferred_element_type=jnp.float32)
            t1 = jnp.dot(act, b_ref[1], preferred_element_type=jnp.float32)
            t2 = jnp.dot(act, b_ref[2], preferred_element_type=jnp.float32)
            return (t1
                    + jnp.dot(s_dn, t0, preferred_element_type=jnp.float32)
                    + jnp.dot(s_up, t2, preferred_element_type=jnp.float32))

        def bn(acc, gamma, beta):
            # Single-pass stats: per-lane sum & sum-of-squares over the lane-dense acc,
            # then per-channel fold + broadcast back to lanes via one MXU matmul with P.
            s = jnp.sum(acc, axis=0, keepdims=True)                 # (1, WC)
            ss = jnp.sum(acc * acc, axis=0, keepdims=True)          # (1, WC)
            mean = jnp.dot(s, p, preferred_element_type=jnp.float32) * inv_cnt
            ex2 = jnp.dot(ss, p, preferred_element_type=jnp.float32) * inv_cnt
            var = ex2 - mean * mean                                 # biased variance (f32)
            return (acc - mean) * jax.lax.rsqrt(var + EPS) * gamma + beta

        # drop_block / aa / se / drop_path / downsample are Identity/None in this config.
        y1 = jnp.maximum(bn(conv3x3(xv, b1_ref), g1_ref[...], be1_ref[...]), 0.0)
        y2 = bn(conv3x3(y1, b2_ref), g2_ref[...], be2_ref[...])
        out_ref[...] = jnp.maximum(y2 + xv, 0.0).astype(out_ref.dtype)   # shortcut = same tensor

    vmem = pl.BlockSpec(memory_space=pltpu.MemorySpace.VMEM)
    flops = 2 * (3 * 2 * M * WC * WC + 2 * 2 * M * M * WC) + 4 * 2 * WC * WC
    bytes_accessed = 4 * (xr.size + B1.size + B2.size + P.size + sdn.size + sup.size
                          + 4 * WC + M * WC)
    cost = pl.CostEstimate(flops=flops, transcendentals=2 * WC, bytes_accessed=bytes_accessed)

    # TODO(synk): for real ResNet shapes (e.g. N=8, H=W=56, C=64) add a grid over N / H tiles
    # with halo + BlockSpec pipelining ("parallel" for megacore) and switch BN to a cross-tile
    # sum/sumsq two-pass scheme; this monolithic version targets shapes that fit in VMEM.
    out = pl.pallas_call(
        kernel,
        out_shape=jax.ShapeDtypeStruct((M, WC), x.dtype),   # lane-dense output (128 lanes)
        in_specs=[vmem] * 10,
        out_specs=vmem,
        cost_estimate=cost,
    )(xr, B1, B2, sdn, sup, P, g1w, b1w, g2w, b2w)
    return out.reshape(N, H, W, C)


def ref_forward(x, w1, g1, b1, w2, g2, b2):
    """Pure-JAX reference (same semantics as the PyTorch forward, NHWC)."""
    dn = ("NHWC", "HWIO", "NHWC")
    y = jax.lax.conv_general_dilated(x, w1, (1, 1), ((1, 1), (1, 1)), dimension_numbers=dn)
    m = y.mean(axis=(0, 1, 2))
    v = ((y - m) ** 2).mean(axis=(0, 1, 2))
    y = jnp.maximum((y - m) * jax.lax.rsqrt(v + EPS) * g1 + b1, 0.0)
    y = jax.lax.conv_general_dilated(y, w2, (1, 1), ((1, 1), (1, 1)), dimension_numbers=dn)
    m = y.mean(axis=(0, 1, 2))
    v = ((y - m) ** 2).mean(axis=(0, 1, 2))
    y = (y - m) * jax.lax.rsqrt(v + EPS) * g2 + b2
    return jnp.maximum(y + x, 0.0)


if __name__ == "__main__":
    # Small shapes: batch=2, inplanes=planes=8, spatial=16x16 (stride=1, no downsample).
    # W*C = 128 -> exactly one lane-dense vreg row per image row.
    N, H, W, C = 2, 16, 16, 8

    key = jax.random.PRNGKey(0)
    kx, kw1, kw2, kg1, kb1, kg2, kb2 = jax.random.split(key, 7)

    x = jax.random.normal(kx, (N, H, W, C), dtype=jnp.float32)
    w1 = jax.random.normal(kw1, (3, 3, C, C), dtype=jnp.float32) * (1.0 / (9 * C)) ** 0.5
    w2 = jax.random.normal(kw2, (3, 3, C, C), dtype=jnp.float32) * (1.0 / (9 * C)) ** 0.5
    g1 = 1.0 + 0.1 * jax.random.normal(kg1, (C,), dtype=jnp.float32)
    b1 = 0.1 * jax.random.normal(kb1, (C,), dtype=jnp.float32)
    g2 = 1.0 + 0.1 * jax.random.normal(kg2, (C,), dtype=jnp.float32)
    b2 = 0.1 * jax.random.normal(kb2, (C,), dtype=jnp.float32)

    out = jax.block_until_ready(basic_block30(x, w1, g1, b1, w2, g2, b2))
    ref = jax.block_until_ready(ref_forward(x, w1, g1, b1, w2, g2, b2))

    assert out.shape == (N, H, W, C)
    max_err = float(jnp.abs(out - ref).max())
    assert jnp.allclose(out, ref, atol=2e-3, rtol=2e-3), max_err

    print("KERNEL_OK")
</pallas_src>

<mosaic_0001>
module attributes {stable_mosaic.version = 11 : i64} {
  func.func @kernel(%arg0: memref<32x128xf32, #tpu.memory_space<vmem>>, %arg1: memref<3x128x128xf32, #tpu.memory_space<vmem>>, %arg2: memref<3x128x128xf32, #tpu.memory_space<vmem>>, %arg3: memref<32x32xf32, #tpu.memory_space<vmem>>, %arg4: memref<32x32xf32, #tpu.memory_space<vmem>>, %arg5: memref<128x128xf32, #tpu.memory_space<vmem>>, %arg6: memref<1x128xf32, #tpu.memory_space<vmem>>, %arg7: memref<1x128xf32, #tpu.memory_space<vmem>>, %arg8: memref<1x128xf32, #tpu.memory_space<vmem>>, %arg9: memref<1x128xf32, #tpu.memory_space<vmem>>, %arg10: memref<32x128xf32, #tpu.memory_space<vmem>>) attributes {dimension_semantics = [], scalar_prefetch = 0 : i64, scratch_operands = 0 : i64, tpu.core_type = #tpu.core_type<tc>} {
    %c0 = arith.constant 0 : index
    %c0_0 = arith.constant 0 : index
    %0 = vector.load %arg0[%c0, %c0_0] : memref<32x128xf32, #tpu.memory_space<vmem>>, vector<32x128xf32>
    %c0_1 = arith.constant 0 : index
    %c0_2 = arith.constant 0 : index
    %1 = vector.load %arg3[%c0_1, %c0_2] : memref<32x32xf32, #tpu.memory_space<vmem>>, vector<32x32xf32>
    %c0_3 = arith.constant 0 : index
    %c0_4 = arith.constant 0 : index
    %2 = vector.load %arg4[%c0_3, %c0_4] : memref<32x32xf32, #tpu.memory_space<vmem>>, vector<32x32xf32>
    %c0_5 = arith.constant 0 : index
    %c0_6 = arith.constant 0 : index
    %3 = vector.load %arg5[%c0_5, %c0_6] : memref<128x128xf32, #tpu.memory_space<vmem>>, vector<128x128xf32>
    %c0_7 = arith.constant 0 : index
    %c0_8 = arith.constant 0 : index
    %c0_9 = arith.constant 0 : index
    %4 = vector.load %arg1[%c0_7, %c0_8, %c0_9] : memref<3x128x128xf32, #tpu.memory_space<vmem>>, vector<1x128x128xf32>
    %5 = vector.shape_cast %4 : vector<1x128x128xf32> to vector<128x128xf32>
    %cst = arith.constant dense<0.000000e+00> : vector<32x128xf32>
    %6 = tpu.matmul %0, %5, %cst {dimension_numbers = #tpu.dot_dimension_numbers<[1], [0], [0], [1], [0, 0, 1, 1], [], []>} : vector<32x128xf32>, vector<128x128xf32>, vector<32x128xf32> -> vector<32x128xf32>
    %c1 = arith.constant 1 : index
    %c0_10 = arith.constant 0 : index
    %c0_11 = arith.constant 0 : index
    %7 = vector.load %arg1[%c1, %c0_10, %c0_11] : memref<3x128x128xf32, #tpu.memory_space<vmem>>, vector<1x128x128xf32>
    %8 = vector.shape_cast %7 : vector<1x128x128xf32> to vector<128x128xf32>
    %cst_12 = arith.constant dense<0.000000e+00> : vector<32x128xf32>
    %9 = tpu.matmul %0, %8, %cst_12 {dimension_numbers = #tpu.dot_dimension_numbers<[1], [0], [0], [1], [0, 0, 1, 1], [], []>} : vector<32x128xf32>, vector<128x128xf32>, vector<32x128xf32> -> vector<32x128xf32>
    %c2 = arith.constant 2 : index
    %c0_13 = arith.constant 0 : index
    %c0_14 = arith.constant 0 : index
    %10 = vector.load %arg1[%c2, %c0_13, %c0_14] : memref<3x128x128xf32, #tpu.memory_space<vmem>>, vector<1x128x128xf32>
    %11 = vector.shape_cast %10 : vector<1x128x128xf32> to vector<128x128xf32>
    %cst_15 = arith.constant dense<0.000000e+00> : vector<32x128xf32>
    %12 = tpu.matmul %0, %11, %cst_15 {dimension_numbers = #tpu.dot_dimension_numbers<[1], [0], [0], [1], [0, 0, 1, 1], [], []>} : vector<32x128xf32>, vector<128x128xf32>, vector<32x128xf32> -> vector<32x128xf32>
    %cst_16 = arith.constant dense<0.000000e+00> : vector<32x128xf32>
    %13 = tpu.matmul %1, %6, %cst_16 {dimension_numbers = #tpu.dot_dimension_numbers<[1], [0], [0], [1], [0, 0, 1, 1], [], []>} : vector<32x32xf32>, vector<32x128xf32>, vector<32x128xf32> -> vector<32x128xf32>
    %14 = arith.addf %9, %13 : vector<32x128xf32>
    %cst_17 = arith.constant dense<0.000000e+00> : vector<32x128xf32>
    %15 = tpu.matmul %2, %12, %cst_17 {dimension_numbers = #tpu.dot_dimension_numbers<[1], [0], [0], [1], [0, 0, 1, 1], [], []>} : vector<32x32xf32>, vector<32x128xf32>, vector<32x128xf32> -> vector<32x128xf32>
    %16 = arith.addf %14, %15 : vector<32x128xf32>
    %c0_18 = arith.constant 0 : index
    %c0_19 = arith.constant 0 : index
    %17 = vector.load %arg6[%c0_18, %c0_19] : memref<1x128xf32, #tpu.memory_space<vmem>>, vector<1x128xf32>
    %c0_20 = arith.constant 0 : index
    %c0_21 = arith.constant 0 : index
    %18 = vector.load %arg7[%c0_20, %c0_21] : memref<1x128xf32, #tpu.memory_space<vmem>>, vector<1x128xf32>
    %cst_22 = arith.constant dense<0.000000e+00> : vector<128xf32>
    %19 = vector.multi_reduction <add>, %16, %cst_22 [0] : vector<32x128xf32> to vector<128xf32>
    %20 = vector.shape_cast %19 : vector<128xf32> to vector<1x128xf32>
    %21 = arith.mulf %16, %16 : vector<32x128xf32>
    %cst_23 = arith.constant dense<0.000000e+00> : vector<128xf32>
    %22 = vector.multi_reduction <add>, %21, %cst_23 [0] : vector<32x128xf32> to vector<128xf32>
    %23 = vector.shape_cast %22 : vector<128xf32> to vector<1x128xf32>
    %cst_24 = arith.constant dense<0.000000e+00> : vector<1x128xf32>
    %24 = tpu.matmul %20, %3, %cst_24 {dimension_numbers = #tpu.dot_dimension_numbers<[1], [0], [0], [1], [0, 0, 1, 1], [], []>} : vector<1x128xf32>, vector<128x128xf32>, vector<1x128xf32> -> vector<1x128xf32>
    %cst_25 = arith.constant 0.001953125 : f32
    %25 = vector.broadcast %cst_25 : f32 to vector<1x128xf32>
    %26 = arith.mulf %24, %25 : vector<1x128xf32>
    %cst_26 = arith.constant dense<0.000000e+00> : vector<1x128xf32>
    %27 = tpu.matmul %23, %3, %cst_26 {dimension_numbers = #tpu.dot_dimension_numbers<[1], [0], [0], [1], [0, 0, 1, 1], [], []>} : vector<1x128xf32>, vector<128x128xf32>, vector<1x128xf32> -> vector<1x128xf32>
    %cst_27 = arith.constant 0.001953125 : f32
    %28 = vector.broadcast %cst_27 : f32 to vector<1x128xf32>
    %29 = arith.mulf %27, %28 : vector<1x128xf32>
    %30 = arith.mulf %26, %26 : vector<1x128xf32>
    %31 = arith.subf %29, %30 : vector<1x128xf32>
    %32 = vector.broadcast %26 : vector<1x128xf32> to vector<32x128xf32>
    %33 = arith.subf %16, %32 : vector<32x128xf32>
    %cst_28 = arith.constant 9.99999974E-6 : f32
    %34 = vector.broadcast %cst_28 : f32 to vector<1x128xf32>
    %35 = arith.addf %31, %34 : vector<1x128xf32>
    %36 = math.rsqrt %35 : vector<1x128xf32>
    %37 = vector.broadcast %36 : vector<1x128xf32> to vector<32x128xf32>
    %38 = arith.mulf %33, %37 : vector<32x128xf32>
    %39 = vector.broadcast %17 : vector<1x128xf32> to vector<32x128xf32>
    %40 = arith.mulf %38, %39 : vector<32x128xf32>
    %41 = vector.broadcast %18 : vector<1x128xf32> to vector<32x128xf32>
    %42 = arith.addf %40, %41 : vector<32x128xf32>
    %cst_29 = arith.constant 0.000000e+00 : f32
    %43 = vector.broadcast %cst_29 : f32 to vector<32x128xf32>
    %44 = arith.maximumf %42, %43 : vector<32x128xf32>
    %c0_30 = arith.constant 0 : index
    %c0_31 = arith.constant 0 : index
    %c0_32 = arith.constant 0 : index
    %45 = vector.load %arg2[%c0_30, %c0_31, %c0_32] : memref<3x128x128xf32, #tpu.memory_space<vmem>>, vector<1x128x128xf32>
    %46 = vector.shape_cast %45 : vector<1x128x128xf32> to vector<128x128xf32>
    %cst_33 = arith.constant dense<0.000000e+00> : vector<32x128xf32>
    %47 = tpu.matmul %44, %46, %cst_33 {dimension_numbers = #tpu.dot_dimension_numbers<[1], [0], [0], [1], [0, 0, 1, 1], [], []>} : vector<32x128xf32>, vector<128x128xf32>, vector<32x128xf32> -> vector<32x128xf32>
    %c1_34 = arith.constant 1 : index
    %c0_35 = arith.constant 0 : index
    %c0_36 = arith.constant 0 : index
    %48 = vector.load %arg2[%c1_34, %c0_35, %c0_36] : memref<3x128x128xf32, #tpu.memory_space<vmem>>, vector<1x128x128xf32>
    %49 = vector.shape_cast %48 : vector<1x128x128xf32> to vector<128x128xf32>
    %cst_37 = arith.constant dense<0.000000e+00> : vector<32x128xf32>
    %50 = tpu.matmul %44, %49, %cst_37 {dimension_numbers = #tpu.dot_dimension_numbers<[1], [0], [0], [1], [0, 0, 1, 1], [], []>} : vector<32x128xf32>, vector<128x128xf32>, vector<32x128xf32> -> vector<32x128xf32>
    %c2_38 = arith.constant 2 : index
    %c0_39 = arith.constant 0 : index
    %c0_40 = arith.constant 0 : index
    %51 = vector.load %arg2[%c2_38, %c0_39, %c0_40] : memref<3x128x128xf32, #tpu.memory_space<vmem>>, vector<1x128x128xf32>
    %52 = vector.shape_cast %51 : vector<1x128x128xf32> to vector<128x128xf32>
    %cst_41 = arith.constant dense<0.000000e+00> : vector<32x128xf32>
    %53 = tpu.matmul %44, %52, %cst_41 {dimension_numbers = #tpu.dot_dimension_numbers<[1], [0], [0], [1], [0, 0, 1, 1], [], []>} : vector<32x128xf32>, vector<128x128xf32>, vector<32x128xf32> -> vector<32x128xf32>
    %cst_42 = arith.constant dense<0.000000e+00> : vector<32x128xf32>
    %54 = tpu.matmul %1, %47, %cst_42 {dimension_numbers = #tpu.dot_dimension_numbers<[1], [0], [0], [1], [0, 0, 1, 1], [], []>} : vector<32x32xf32>, vector<32x128xf32>, vector<32x128xf32> -> vector<32x128xf32>
    %55 = arith.addf %50, %54 : vector<32x128xf32>
    %cst_43 = arith.constant dense<0.000000e+00> : vector<32x128xf32>
    %56 = tpu.matmul %2, %53, %cst_43 {dimension_numbers = #tpu.dot_dimension_numbers<[1], [0], [0], [1], [0, 0, 1, 1], [], []>} : vector<32x32xf32>, vector<32x128xf32>, vector<32x128xf32> -> vector<32x128xf32>
    %57 = arith.addf %55, %56 : vector<32x128xf32>
    %c0_44 = arith.constant 0 : index
    %c0_45 = arith.constant 0 : index
    %58 = vector.load %arg8[%c0_44, %c0_45] : memref<1x128xf32, #tpu.memory_space<vmem>>, vector<1x128xf32>
    %c0_46 = arith.constant 0 : index
    %c0_47 = arith.constant 0 : index
    %59 = vector.load %arg9[%c0_46, %c0_47] : memref<1x128xf32, #tpu.memory_space<vmem>>, vector<1x128xf32>
    %cst_48 = arith.constant dense<0.000000e+00> : vector<128xf32>
    %60 = vector.multi_reduction <add>, %57, %cst_48 [0] : vector<32x128xf32> to vector<128xf32>
    %61 = vector.shape_cast %60 : vector<128xf32> to vector<1x128xf32>
    %62 = arith.mulf %57, %57 : vector<32x128xf32>
    %cst_49 = arith.constant dense<0.000000e+00> : vector<128xf32>
    %63 = vector.multi_reduction <add>, %62, %cst_49 [0] : vector<32x128xf32> to vector<128xf32>
    %64 = vector.shape_cast %63 : vector<128xf32> to vector<1x128xf32>
    %cst_50 = arith.constant dense<0.000000e+00> : vector<1x128xf32>
    %65 = tpu.matmul %61, %3, %cst_50 {dimension_numbers = #tpu.dot_dimension_numbers<[1], [0], [0], [1], [0, 0, 1, 1], [], []>} : vector<1x128xf32>, vector<128x128xf32>, vector<1x128xf32> -> vector<1x128xf32>
    %cst_51 = arith.constant 0.001953125 : f32
    %66 = vector.broadcast %cst_51 : f32 to vector<1x128xf32>
    %67 = arith.mulf %65, %66 : vector<1x128xf32>
    %cst_52 = arith.constant dense<0.000000e+00> : vector<1x128xf32>
    %68 = tpu.matmul %64, %3, %cst_52 {dimension_numbers = #tpu.dot_dimension_numbers<[1], [0], [0], [1], [0, 0, 1, 1], [], []>} : vector<1x128xf32>, vector<128x128xf32>, vector<1x128xf32> -> vector<1x128xf32>
    %cst_53 = arith.constant 0.001953125 : f32
    %69 = vector.broadcast %cst_53 : f32 to vector<1x128xf32>
    %70 = arith.mulf %68, %69 : vector<1x128xf32>
    %71 = arith.mulf %67, %67 : vector<1x128xf32>
    %72 = arith.subf %70, %71 : vector<1x128xf32>
    %73 = vector.broadcast %67 : vector<1x128xf32> to vector<32x128xf32>
    %74 = arith.subf %57, %73 : vector<32x128xf32>
    %cst_54 = arith.constant 9.99999974E-6 : f32
    %75 = vector.broadcast %cst_54 : f32 to vector<1x128xf32>
    %76 = arith.addf %72, %75 : vector<1x128xf32>
    %77 = math.rsqrt %76 : vector<1x128xf32>
    %78 = vector.broadcast %77 : vector<1x128xf32> to vector<32x128xf32>
    %79 = arith.mulf %74, %78 : vector<32x128xf32>
    %80 = vector.broadcast %58 : vector<1x128xf32> to vector<32x128xf32>
    %81 = arith.mulf %79, %80 : vector<32x128xf32>
    %82 = vector.broadcast %59 : vector<1x128xf32> to vector<32x128xf32>
    %83 = arith.addf %81, %82 : vector<32x128xf32>
    %84 = arith.addf %83, %0 : vector<32x128xf32>
    %cst_55 = arith.constant 0.000000e+00 : f32
    %85 = vector.broadcast %cst_55 : f32 to vector<32x128xf32>
    %86 = arith.maximumf %84, %85 : vector<32x128xf32>
    %c0_56 = arith.constant 0 : index
    %c0_57 = arith.constant 0 : index
    %87 = vector.load %arg10[%c0_56, %c0_57] : memref<32x128xf32, #tpu.memory_space<vmem>>, vector<32x128xf32>
    tpu.vector_store %arg10[%c0_56, %c0_57], %86 {strides = array<i32>} : memref<32x128xf32, #tpu.memory_space<vmem>>, vector<32x128xf32>,
    return
  }
}

</mosaic_0001>

<bundles_post_ra>
// kernel: tpu_custom_call.1
= control target key start
LH: loop header
LB: loop body
LE: loop exit
PB: predicated region body
PF: predicated region fallthrough
CT: control target
= control target key end

     0   :  { %15 = vsyncpa [#allocation3], 0  ;;  %s3172_s0 = inlined_call_operand.hbm [shape: f32[32,128], index: 0, kind: input, shape index: {}]   ;;  %s3173_s1 = inlined_call_operand.hbm [shape: f32[3,128,128], index: 1, kind: input, shape index: {}]   ;;  %s3174_s2 = inlined_call_operand.hbm [shape: f32[3,128,128], index: 2, kind: input, shape index: {}]   ;;  %s3175_s3 = inlined_call_operand.hbm [shape: f32[32,32], index: 3, kind: input, shape index: {}]   ;;  %s3176_s4 = inlined_call_operand.hbm [shape: f32[32,32], index: 4, kind: input, shape index: {}]   ;;  %s3177_s5 = inlined_call_operand.hbm [shape: f32[128,128], index: 5, kind: input, shape index: {}]   ;;  %s3178_s6 = inlined_call_operand.vmem [shape: f32[1,128], index: 6, kind: input, shape index: {}]   ;;  %s3179_s7 = inlined_call_operand.vmem [shape: f32[1,128], index: 7, kind: input, shape index: {}]   ;;  %s3180_s8 = inlined_call_operand.vmem [shape: f32[1,128], index: 8, kind: input, shape index: {}]   ;;  %s3181_s9 = inlined_call_operand.vmem [shape: f32[1,128], index: 9, kind: input, shape index: {}]   ;;  %s3182_s10 = inlined_call_operand.hbm [shape: f32[32,128], index: 10, kind: output, shape index: {}]  }
   0x1   :  { %16 = vsyncpa [#allocation6], 0 }
   0x2   :  { %17 = vsyncpa [#allocation9], 0 }
   0x3   :  { %18 = vsyncpa [#allocation12], 0 }
   0x4   :  { %19 = vsyncpa [#allocation4], 0  ;;  %s2758_s13 = smov [#allocation5]   ;;  %s2759_s15 = smov [#allocation8]  }
   0x5   :  { %s37_s14 = sshll.u32 %s2758_s13, 4  ;;  %s61_s16 = sshll.u32 %s2759_s15, 4  ;;  %s38_s14 = int_to_ptr.vmem [resolvable:$true] %s37_s14  ;;  %s2825_s16 = int_to_ptr.vmem [resolvable:$true] %s61_s16 }
   0x6   :  { %s2594_s19 = scalar_lea.hbm %s3173_s1, 6144 }
   0x7   :  { %p2595_p0 = scmp.ne.s32.totalorder %s3173_s1, %s2594_s19  ;;  %p2598_p1 = scmp.lt.u32.totalorder %s2594_s19, %s3173_s1 }
   0x9   :  { %p2600_p2 = pnand %p2598_p1, %p2595_p0 }
   0xb   :  { %2603 = shalt.err (!%p2600_p2)
}
   0xc   :  { %s2604_s24 = scalar_lea.vmem %s38_s14, 6144  ;;  %p2609_p4 = scmp.lt.s32.totalorder %s38_s14, %s38_s14 }
   0xd   :  { %p2605_p3 = scmp.ne.s32.totalorder %s38_s14, %s2604_s24  ;;  %p2610_p5 = scmp.lt.s32.totalorder %s2604_s24, %s2604_s24 }
   0xf   :  { %p2611_p6 = por %p2610_p5, %p2609_p4 }
  0x11   :  { %p2612_p7 = pnand %p2611_p6, %p2605_p3 }
  0x13   :  { %2615 = shalt.err (!%p2612_p7)
}
  0x14   :  { %s2760_s25 = smov 128   ;;  %s2761_s26 = smov 8  }
  0x15   :  { %43 = dma.hbm_to_vmem [thread:$0]  %s3173_s1, 6144, %s38_s14, [#allocation6], %s2760_s25, %s2760_s25, %s2761_s26  }
  0x16   :  { %s2616_s11 = scalar_lea.hbm %s3175_s3, 512 }
  0x17   :  { %p2617_p8 = scmp.ne.s32.totalorder %s3175_s3, %s2616_s11  ;;  %p2620_p9 = scmp.lt.u32.totalorder %s2616_s11, %s3175_s3 }
  0x19   :  { %p2622_p10 = pnand %p2620_p9, %p2617_p8 }
  0x1b   :  { %2625 = shalt.err (!%p2622_p10)
}
  0x1c   :  { %s2626_s18 = scalar_lea.vmem %s2825_s16, 512  ;;  %p2631_p12 = scmp.lt.s32.totalorder %s2825_s16, %s2825_s16 }
  0x1d   :  { %p2627_p11 = scmp.ne.s32.totalorder %s2825_s16, %s2626_s18  ;;  %p2632_p13 = scmp.lt.s32.totalorder %s2626_s18, %s2626_s18 }
  0x1f   :  { %p2633_p0 = por %p2632_p13, %p2631_p12 }
  0x21   :  { %p2634_p1 = pnand %p2633_p0, %p2627_p11 }
  0x23   :  { %2637 = shalt.err (!%p2634_p1)
}
  0x24   :  { %67 = dma.hbm_to_vmem [thread:$0]  %s3175_s3, 512, %s2825_s16, [#allocation9], %s2760_s25, %s2760_s25, %s2761_s26  }
  0x25   :  { %s2762_s19 = smov [#allocation2]   ;;  %s2763_s21 = smov [#allocation7]  }
  0x26   :  { %s25_s20 = sshll.u32 %s2762_s19, 4  ;;  %s49_s22 = sshll.u32 %s2763_s21, 4  ;;  %s26_s20 = int_to_ptr.vmem [resolvable:$true] %s25_s20  ;;  %s2862_s22 = int_to_ptr.vmem [resolvable:$true] %s49_s22 }
  0x27   :  { %s2638_s27 = scalar_lea.hbm %s3172_s0, 512 }
  0x28   :  { %p2639_p2 = scmp.ne.s32.totalorder %s3172_s0, %s2638_s27  ;;  %p2642_p3 = scmp.lt.u32.totalorder %s2638_s27, %s3172_s0 }
  0x2a   :  { %p2644_p4 = pnand %p2642_p3, %p2639_p2 }
  0x2c   :  { %2647 = shalt.err (!%p2644_p4)
}
  0x2d   :  { %s2648_s3 = scalar_lea.vmem %s26_s20, 512  ;;  %p2653_p6 = scmp.lt.s32.totalorder %s26_s20, %s26_s20 }
  0x2e   :  { %p2649_p5 = scmp.ne.s32.totalorder %s26_s20, %s2648_s3  ;;  %p2654_p7 = scmp.lt.s32.totalorder %s2648_s3, %s2648_s3 }
  0x30   :  { %p2655_p8 = por %p2654_p7, %p2653_p6 }
  0x32   :  { %p2656_p9 = pnand %p2655_p8, %p2649_p5 }
  0x34   :  { %2659 = shalt.err (!%p2656_p9)
}
  0x35   :  { %31 = dma.hbm_to_vmem [thread:$0]  %s3172_s0, 512, %s26_s20, [#allocation3], %s2760_s25, %s2760_s25, %s2761_s26  }
  0x36   :  { %s2660_s17 = scalar_lea.hbm %s3174_s2, 6144 }
  0x37   :  { %p2661_p10 = scmp.ne.s32.totalorder %s3174_s2, %s2660_s17  ;;  %p2664_p11 = scmp.lt.u32.totalorder %s2660_s17, %s3174_s2 }
  0x39   :  { %p2666_p12 = pnand %p2664_p11, %p2661_p10 }
  0x3b   :  { %2669 = shalt.err (!%p2666_p12)
}
  0x3c   :  { %s2670_s21 = scalar_lea.vmem %s2862_s22, 6144  ;;  %p2675_p0 = scmp.lt.s32.totalorder %s2862_s22, %s2862_s22 }
  0x3d   :  { %p2671_p13 = scmp.ne.s32.totalorder %s2862_s22, %s2670_s21  ;;  %p2676_p1 = scmp.lt.s32.totalorder %s2670_s21, %s2670_s21 }
  0x3f   :  { %p2677_p2 = por %p2676_p1, %p2675_p0 }
  0x41   :  { %p2678_p3 = pnand %p2677_p2, %p2671_p13 }
  0x43   :  { %2681 = shalt.err (!%p2678_p3)
}
  0x44   :  { %55 = dma.hbm_to_vmem [thread:$0]  %s3174_s2, 6144, %s2862_s22, [#allocation6], %s2760_s25, %s2760_s25, %s2761_s26  }
  0x45   :  { %s2764_s23 = smov [#allocation10]   ;;  %s2765_s27 = smov [#allocation11]  }
  0x46   :  { %s73_s24 = sshll.u32 %s2764_s23, 4  ;;  %s85_s28 = sshll.u32 %s2765_s27, 4  ;;  %s74_s24 = int_to_ptr.vmem [resolvable:$true] %s73_s24  ;;  %s2899_s28 = int_to_ptr.vmem [resolvable:$true] %s85_s28 }
  0x47   :  { %s2682_s11 = scalar_lea.hbm %s3176_s4, 512 }
  0x48   :  { %p2683_p4 = scmp.ne.s32.totalorder %s3176_s4, %s2682_s11  ;;  %p2686_p5 = scmp.lt.u32.totalorder %s2682_s11, %s3176_s4 }
  0x4a   :  { %p2688_p6 = pnand %p2686_p5, %p2683_p4 }
  0x4c   :  { %2691 = shalt.err (!%p2688_p6)
}
  0x4d   :  { %s2692_s2 = scalar_lea.vmem %s74_s24, 512  ;;  %p2697_p8 = scmp.lt.s32.totalorder %s74_s24, %s74_s24 }
  0x4e   :  { %p2693_p7 = scmp.ne.s32.totalorder %s74_s24, %s2692_s2  ;;  %p2698_p9 = scmp.lt.s32.totalorder %s2692_s2, %s2692_s2 }
  0x50   :  { %p2699_p10 = por %p2698_p9, %p2697_p8 }
  0x52   :  { %p2700_p11 = pnand %p2699_p10, %p2693_p7 }
  0x54   :  { %2703 = shalt.err (!%p2700_p11)
}
  0x55   :  { %79 = dma.hbm_to_vmem [thread:$0]  %s3176_s4, 512, %s74_s24, [#allocation9], %s2760_s25, %s2760_s25, %s2761_s26  }
  0x56   :  { %s2704_s1 = scalar_lea.hbm %s3177_s5, 2048 }
  0x57   :  { %p2705_p12 = scmp.ne.s32.totalorder %s3177_s5, %s2704_s1  ;;  %p2708_p13 = scmp.lt.u32.totalorder %s2704_s1, %s3177_s5 }
  0x59   :  { %p2710_p0 = pnand %p2708_p13, %p2705_p12 }
  0x5b   :  { %2713 = shalt.err (!%p2710_p0)
}
  0x5c   :  { %s2714_s20 = scalar_lea.vmem %s2899_s28, 2048  ;;  %p2719_p2 = scmp.lt.s32.totalorder %s2899_s28, %s2899_s28 }
  0x5d   :  { %p2715_p1 = scmp.ne.s32.totalorder %s2899_s28, %s2714_s20  ;;  %p2720_p3 = scmp.lt.s32.totalorder %s2714_s20, %s2714_s20 }
  0x5f   :  { %p2721_p4 = por %p2720_p3, %p2719_p2 }
  0x61   :  { %p2722_p5 = pnand %p2721_p4, %p2715_p1 }
  0x63   :  { %2725 = shalt.err (!%p2722_p5)
}
  0x64   :  { %91 = dma.hbm_to_vmem [thread:$0]  %s3177_s5, 2048, %s2899_s28, [#allocation12], %s2760_s25, %s2760_s25, %s2761_s26  }
  0x65   :  { %2748 = dma.done.wait [#allocation3], 512  }
  0x66   :  { %2749 = vsyncadd [#allocation3], 4294966784 }
  0x67   :  { %2750 = dma.done.wait [#allocation6], 12288  }
  0x68   :  { %2751 = vsyncadd [#allocation6], 4294955008 }
  0x69   :  { %2752 = dma.done.wait [#allocation9], 1024  }
  0x6a   :  { %2753 = vsyncadd [#allocation9], 4294966272 }
  0x6b   :  { %2754 = dma.done.wait [#allocation12], 2048  }
  0x6c   :  { %2755 = vsyncadd [#allocation12], 4294965248  ;;  %v146_v0 = vld [vmem:[#allocation5] sm:$0xff]  ;;  %v147_v1 = vld [vmem:[#allocation5 + $0x8] sm:$0xff]  ;;  %vm366_vm0 = vcmask 261120   ;;  %vm2767_vm1 = vmmov 0  }
  0x6d   :  { %v148_v2 = vld [vmem:[#allocation5 + $0x10] sm:$0xff]  ;;  %v2241_v3 = vpack.c.bf16 %v147_v1, %v146_v0  ;;  %v149_v4 = vld [vmem:[#allocation5 + $0x18] sm:$0xff]  ;;  %v265_v5 = vld [vmem:[#allocation5 + $0x100] sm:$0xff]  ;;  %s2769_s11 = smov [#allocation13]  }
  0x6e   :  { %v266_v6 = vld [vmem:[#allocation5 + $0x108] sm:$0xff]  ;;  %v2245_v7 = vpack.c.bf16 %v149_v4, %v148_v2  ;;  %v150_v9 = vld [vmem:[#allocation5 + $0x20] sm:$0xff]  ;;  %v267_v11 = vld [vmem:[#allocation5 + $0x110] sm:$0xff]  ;;  %s1562_s3 = sshll.u32 %s2769_s11, 4  ;;  %s1563_s3 = int_to_ptr.vmem [resolvable:$true] %s1562_s3 }
  0x6f   :  { %v2273_v8 = vpack.c.bf16 %v266_v6, %v265_v5  ;;  %v151_v10 = vld [vmem:[#allocation5 + $0x28] sm:$0xff]  ;;  %2242 = vmatprep.subr.bf16.mxu0 %v2241_v3  ;;  %v268_v12 = vld [vmem:[#allocation5 + $0x118] sm:$0xff]  ;;  %v269_v14 = vld [vmem:[#allocation5 + $0x120] sm:$0xff]  ;;  %p2731_p7 = scmp.lt.s32.totalorder %s1563_s3, %s1563_s3 }
  0x70   :  { %2244 = vmatpush3.bf16.msra.mxu0 %v2241_v3  ;;  %v2277_v13 = vpack.c.bf16 %v268_v12, %v267_v11  ;;  %v270_v15 = vld [vmem:[#allocation5 + $0x128] sm:$0xff]  ;;  %v2249_v16 = vpack.c.bf16 %v151_v10, %v150_v9  ;;  %v152_v17 = vld [vmem:[#allocation5 + $0x30] sm:$0xff]  ;;  %v153_v18 = vld [vmem:[#allocation5 + $0x38] sm:$0xff] }
  0x71   :  { %2274 = vmatprep.subr.bf16.mxu1 %v2273_v8  ;;  %2246 = vmatprep.subr.bf16.mxu0 %v2245_v7  ;;  %v2281_v19 = vpack.c.bf16 %v270_v15, %v269_v14  ;;  %v271_v20 = vld [vmem:[#allocation5 + $0x130] sm:$0xff]  ;;  %v272_v21 = vld [vmem:[#allocation5 + $0x138] sm:$0xff]  ;;  %v2253_v22 = vpack.c.bf16 %v153_v18, %v152_v17  ;;  %v2936_v23 = vld [vmem:[#allocation2] sm:$0xff] }
  0x72   :  { %2276 = vmatpush3.bf16.msra.mxu1 %v2273_v8  ;;  %v154_v24 = vld [vmem:[#allocation5 + $0x40] sm:$0xff]  ;;  %v155_v25 = vld [vmem:[#allocation5 + $0x48] sm:$0xff]  ;;  %v2285_v26 = vpack.c.bf16 %v272_v21, %v271_v20  ;;  %1849 = vmatprep.mubr.f32.mxu0 %v2936_v23  ;;  %v156_v30 = vld [vmem:[#allocation5 + $0x50] sm:$0xff] }
  0x73   :  { %2278 = vmatprep.subr.bf16.mxu1 %v2277_v13  ;;  %v273_v27 = vld [vmem:[#allocation5 + $0x140] sm:$0xff]  ;;  %v274_v28 = vld [vmem:[#allocation5 + $0x148] sm:$0xff]  ;;  %1887 = vmatprep.mubr.f32.mxu1 %v2936_v23  ;;  %v2257_v29 = vpack.c.bf16 %v155_v25, %v154_v24  ;;  %v157_v31 = vld [vmem:[#allocation5 + $0x58] sm:$0xff] }
  0x74   :  { %2248 = vmatpush3.bf16.msra.mxu0 %v2245_v7  ;;  %v2289_v32 = vpack.c.bf16 %v274_v28, %v273_v27  ;;  %v275_v33 = vld [vmem:[#allocation5 + $0x150] sm:$0xff]  ;;  %v276_v34 = vld [vmem:[#allocation5 + $0x158] sm:$0xff]  ;;  %v2261_v35 = vpack.c.bf16 %v157_v31, %v156_v30  ;;  %v158_v36 = vld [vmem:[#allocation5 + $0x60] sm:$0xff]  ;;  %v2766_v31 = vmov 0.0|0.0  }
  0x75   :  { %2250 = vmatprep.subr.bf16.mxu0 %v2249_v16  ;;  %v159_v37 = vld [vmem:[#allocation5 + $0x68] sm:$0xff]  ;;  %v2293_v38 = vpack.c.bf16 %v276_v34, %v275_v33  ;;  %v277_v39 = vld [vmem:[#allocation5 + $0x160] sm:$0xff]  ;;  %v160_v42 = vld [vmem:[#allocation5 + $0x70] sm:$0xff] }
  0x76   :  { %2280 = vmatpush3.bf16.msra.mxu1 %v2277_v13  ;;  %v278_v40 = vld [vmem:[#allocation5 + $0x168] sm:$0xff]  ;;  %v2265_v41 = vpack.c.bf16 %v159_v37, %v158_v36  ;;  %v161_v43 = vld [vmem:[#allocation5 + $0x78] sm:$0xff]  ;;  %v279_v45 = vld [vmem:[#allocation5 + $0x170] sm:$0xff] }
  0x77   :  { %2282 = vmatprep.subr.bf16.mxu1 %v2281_v19  ;;  %v2297_v44 = vpack.c.bf16 %v278_v40, %v277_v39  ;;  %v280_v46 = vld [vmem:[#allocation5 + $0x178] sm:$0xff]  ;;  %v2269_v47 = vpack.c.bf16 %v161_v43, %v160_v42  ;;  %v248_v49 = vld [vmem:[#allocation5 + $0x80] sm:$0xff]  ;;  %v249_v50 = vld [vmem:[#allocation5 + $0x88] sm:$0xff] }
  0x78   :  { %2252 = vmatpush3.bf16.msra.mxu0 %v2249_v16  ;;  %v2301_v48 = vpack.c.bf16 %v280_v46, %v279_v45  ;;  %v2313_v51 = vpack.c.bf16 %v249_v50, %v248_v49  ;;  %v250_v52 = vld [vmem:[#allocation5 + $0x90] sm:$0xff]  ;;  %v251_v53 = vld [vmem:[#allocation5 + $0x98] sm:$0xff]  ;;  %v2940_v54 = vld [vmem:[#allocation2 + $0x8] sm:$0xff] }
  0x79   :  { %2254 = vmatprep.subr.bf16.mxu0 %v2253_v22  ;;  %v2942_v55 = vld [vmem:[#allocation2 + $0x10] sm:$0xff]  ;;  %v2317_v56 = vpack.c.bf16 %v251_v53, %v250_v52  ;;  %v252_v57 = vld [vmem:[#allocation5 + $0xa0] sm:$0xff]  ;;  %v253_v58 = vld [vmem:[#allocation5 + $0xa8] sm:$0xff] }
  0x7a   :  { %2284 = vmatpush3.bf16.msra.mxu1 %v2281_v19  ;;  %v2946_v59 = vld [vmem:[#allocation2 + $0x18] sm:$0xff]  ;;  %v2321_v60 = vpack.c.bf16 %v253_v58, %v252_v57  ;;  %v254_v61 = vld [vmem:[#allocation5 + $0xb0] sm:$0xff]  ;;  %v256_v0 = vld [vmem:[#allocation5 + $0xc0] sm:$0xff] }
  0x7b   :  { %2286 = vmatprep.subr.bf16.mxu1 %v2285_v26  ;;  %v255_v62 = vld [vmem:[#allocation5 + $0xb8] sm:$0xff]  ;;  %v257_v1 = vld [vmem:[#allocation5 + $0xc8] sm:$0xff]  ;;  %v258_v3 = vld [vmem:[#allocation5 + $0xd0] sm:$0xff] }
  0x7c   :  { %2256 = vmatpush3.bf16.msra.mxu0 %v2253_v22  ;;  %v2325_v63 = vpack.c.bf16 %v255_v62, %v254_v61  ;;  %v2329_v2 = vpack.c.bf16 %v257_v1, %v256_v0  ;;  %v259_v4 = vld [vmem:[#allocation5 + $0xd8] sm:$0xff]  ;;  %v260_v6 = vld [vmem:[#allocation5 + $0xe0] sm:$0xff]  ;;  %v261_v7 = vld [vmem:[#allocation5 + $0xe8] sm:$0xff]  ;;  %v2768_v0 = vmov 0.0  }
  0x7d   :  { %2258 = vmatprep.subr.bf16.mxu0 %v2257_v29  ;;  %v2333_v5 = vpack.c.bf16 %v259_v4, %v258_v3  ;;  %v2337_v8 = vpack.c.bf16 %v261_v7, %v260_v6  ;;  %v262_v9 = vld [vmem:[#allocation5 + $0xf0] sm:$0xff]  ;;  %v263_v10 = vld [vmem:[#allocation5 + $0xf8] sm:$0xff]  ;;  %v2953_v12 = vld [vmem:[#allocation8] sm:$0xff] }
  0x7e   :  { %2288 = vmatpush3.bf16.msra.mxu1 %v2285_v26  ;;  %v2341_v11 = vpack.c.bf16 %v263_v10, %v262_v9  ;;  %v2960_v25 = vld [vmem:[#allocation8 + $0x8] sm:$0xff]  ;;  %v2962_v26 = vld [vmem:[#allocation8 + $0x10] sm:$0xff]  ;;  %v2968_v27 = vld [vmem:[#allocation8 + $0x18] sm:$0xff] }
  0x7f   :  { %2290 = vmatprep.subr.bf16.mxu1 %v2289_v32  ;;  %v2970_v28 = vld [vmem:[#allocation10] sm:$0xff]  ;;  %v2978_v30 = vld [vmem:[#allocation10 + $0x10] sm:$0xff]  ;;  %v131_v34 = vld [vmem:[#allocation11 + $0x8] sm:$0xff] }
  0x80   :  { %2260 = vmatpush3.bf16.msra.mxu0 %v2257_v29  ;;  %v2976_v29 = vld [vmem:[#allocation10 + $0x8] sm:$0xff]  ;;  %v130_v33 = vld [vmem:[#allocation11] sm:$0xff]  ;;  %v133_v39 = vld [vmem:[#allocation11 + $0x18] sm:$0xff] }
  0x81   :  { %2262 = vmatprep.subr.bf16.mxu0 %v2261_v35  ;;  %v134_v43 = vld [vmem:[#allocation11 + $0x20] sm:$0xff]  ;;  %v136_v46 = vld [vmem:[#allocation11 + $0x30] sm:$0xff]  ;;  %v139_v50 = vld [vmem:[#allocation11 + $0x48] sm:$0xff] }
  0x82   :  { %2292 = vmatpush3.bf16.msra.mxu1 %v2289_v32  ;;  %v2985_v32 = vld [vmem:[#allocation10 + $0x18] sm:$0xff]  ;;  %v138_v49 = vld [vmem:[#allocation11 + $0x40] sm:$0xff]  ;;  %v140_v52 = vld [vmem:[#allocation11 + $0x50] sm:$0xff] }
  0x83   :  { %2294 = vmatprep.subr.bf16.mxu1 %v2293_v38  ;;  %v141_v53 = vld [vmem:[#allocation11 + $0x58] sm:$0xff]  ;;  %v142_v57 = vld [vmem:[#allocation11 + $0x60] sm:$0xff]  ;;  %v143_v58 = vld [vmem:[#allocation11 + $0x68] sm:$0xff] }
  0x84   :  { %2264 = vmatpush3.bf16.msra.mxu0 %v2261_v35  ;;  %v2989_v35 = vpack.c.bf16 %v131_v34, %v130_v33  ;;  %v144_v61 = vld [vmem:[#allocation11 + $0x70] sm:$0xff]  ;;  %v145_v62 = vld [vmem:[#allocation11 + $0x78] sm:$0xff] }
  0x85   :  { %2266 = vmatprep.subr.bf16.mxu0 %v2265_v41 }
  0x86   :  { %2296 = vmatpush3.bf16.msra.mxu1 %v2293_v38  ;;  %v132_v38 = vld [vmem:[#allocation11 + $0x10] sm:$0xff] }
  0x87   :  { %2298 = vmatprep.subr.bf16.mxu1 %v2297_v44  ;;  %v2993_v40 = vpack.c.bf16 %v133_v39, %v132_v38 }
  0x88   :  { %2268 = vmatpush3.bf16.msra.mxu0 %v2265_v41 }
  0x89   :  { %2270 = vmatprep.subr.bf16.mxu0 %v2269_v47 }
  0x8a   :  { %2300 = vmatpush3.bf16.msra.mxu1 %v2297_v44  ;;  %v135_v44 = vld [vmem:[#allocation11 + $0x28] sm:$0xff] }
  0x8b   :  { %2302 = vmatprep.subr.bf16.mxu1 %v2301_v48  ;;  %v2997_v45 = vpack.c.bf16 %v135_v44, %v134_v43 }
  0x8c   :  { %2272 = vmatpush3.bf16.msra.mxu0 %v2269_v47  ;;  %v137_v47 = vld [vmem:[#allocation11 + $0x38] sm:$0xff] }
  0x8d   :  { %2314 = vmatprep.subr.bf16.mxu0 %v2313_v51 }
  0x8e   :  { %2304 = vmatpush3.bf16.msra.mxu1 %v2301_v48  ;;  %v3001_v48 = vpack.c.bf16 %v137_v47, %v136_v46 }
  0x8f   :  { %1850 = vmatmul.mubr.f32.vlgmr.msra.gmra.mrb[0].mxu0 %v2940_v54 }
  0x90   :  { %1852 = vmatprep.mubr.f32.mxu0 %v2942_v55  ;;  %2316 = vmatpush3.bf16.msra.mxu0 %v2313_v51  ;;  %v3005_v51 = vpack.c.bf16 %v139_v50, %v138_v49 }
  0x91   :  { %1888 = vmatmul.mubr.f32.vlgmr.msra.gmra.mrb[0].mxu1 %v2940_v54  ;;  %2318 = vmatprep.subr.bf16.mxu0 %v2317_v56 }
  0x92   :  { %1890 = vmatprep.mubr.f32.mxu1 %v2942_v55 }
  0x93   :  { %1853 = vmatmul.mubr.f32.gmra.mrb[2].mxu0 %v2946_v59 }
  0x94   :  { %1939 = vmatprep.mubr.f32.mxu0 %v2936_v23  ;;  %2320 = vmatpush3.bf16.msra.mxu0 %v2317_v56  ;;  %v3009_v56 = vpack.c.bf16 %v141_v53, %v140_v52  ;;  %v860_v53 = vld [vmem:[#allocation7] sm:$0xff] }
  0x95   :  { %1891 = vmatmul.mubr.f32.gmra.mrb[2].mxu1 %v2946_v59  ;;  %2322 = vmatprep.subr.bf16.mxu0 %v2321_v60 }
  0x96   :  { %1901 = vmatprep.mubr.msk.f32.mxu1 %vm366_vm0, %v2953_v12 }
  0x98   :  { %2324 = vmatpush3.bf16.msra.mxu0 %v2321_v60  ;;  %v3013_v60 = vpack.c.bf16 %v143_v58, %v142_v57  ;;  %v861_v57 = vld [vmem:[#allocation7 + $0x8] sm:$0xff]  ;;  %v979_v58 = vld [vmem:[#allocation7 + $0x100] sm:$0xff] }
  0x99   :  { %2326 = vmatprep.subr.bf16.mxu0 %v2325_v63 }
  0x9c   :  { %2328 = vmatpush3.bf16.msra.mxu0 %v2325_v63  ;;  %v3017_v63 = vpack.c.bf16 %v145_v62, %v144_v61  ;;  %v2401_v61 = vpack.c.bf16 %v861_v57, %v860_v53  ;;  %v980_v62 = vld [vmem:[#allocation7 + $0x108] sm:$0xff] }
  0x9d   :  { %2330 = vmatprep.subr.bf16.mxu0 %v2329_v2  ;;  %v992_v57 = vld [vmem:[#allocation7 + $0x168] sm:$0xff] }
  0xa0   :  { %2332 = vmatpush3.bf16.msra.mxu0 %v2329_v2 }
  0xa1   :  { %2334 = vmatprep.subr.bf16.mxu0 %v2333_v5 }
  0xa4   :  { %2336 = vmatpush3.bf16.msra.mxu0 %v2333_v5 }
  0xa5   :  { %2338 = vmatprep.subr.bf16.mxu0 %v2337_v8 }
  0xa8   :  { %2340 = vmatpush3.bf16.msra.mxu0 %v2337_v8 }
  0xa9   :  { %2342 = vmatprep.subr.bf16.mxu0 %v2341_v11 }
  0xac   :  { %2344 = vmatpush3.bf16.msra.mxu0 %v2341_v11 }
  0xad   :  { %2402 = vmatprep.subr.bf16.mxu0 %v2401_v61 }
  0xaf   :  { %1940 = vmatmul.mubr.f32.vlgmr.msra.gmra.mrb[4].mxu0 %v2940_v54 }
  0xb0   :  { %1942 = vmatprep.mubr.f32.mxu0 %v2942_v55  ;;  %2404 = vmatpush3.bf16.msra.mxu0 %v2401_v61  ;;  %v875_v61 = vld [vmem:[#allocation7 + $0x78] sm:$0xff] }
  0xb3   :  { %1943 = vmatmul.mubr.f32.gmra.mrb[6].mxu0 %v2946_v59 }
 0x162   :  { %v1851_v13 = vpop.f32.mrb[0].mxu0 }
 0x163   :  { %v228_v14 = vpop.f32.mrb[1].mxu0 }
 0x164   :  { %v1889_v15 = vpop.f32.mrb[0].mxu1  ;;  %v2305_v16 = vpack.c.bf16 %v1851_v13, %v228_v14 }
 0x165   :  { %v347_v17 = vpop.f32.mrb[1].mxu1 }
 0x166   :  { %v2345_v18 = vpack.c.bf16 %v1889_v15, %v347_v17  ;;  %v1854_v19 = vpop.f32.mrb[2].mxu0  ;;  %2306 = vmatprep.subr.bf16.mxu1 %v2305_v16 }
 0x167   :  { %v238_v20 = vpop.f32.mrb[3].mxu0  ;;  %2308 = vmatpush3.bf16.msra.mxu1 %v2305_v16 }
 0x168   :  { %v1892_v21 = vpop.f32.mrb[2].mxu1  ;;  %v2309_v22 = vpack.c.bf16 %v1854_v19, %v238_v20 }
 0x169   :  { %v357_v23 = vpop.f32.mrb[3].mxu1 }
 0x16a   :  { %v2349_v24 = vpack.c.bf16 %v1892_v21, %v357_v23  ;;  %2310 = vmatprep.subr.bf16.mxu1 %v2309_v22 }
 0x16b   :  { %2312 = vmatpush3.bf16.msra.mxu1 %v2309_v22 }
 0x16c   :  { %2346 = vmatprep.subr.bf16.mxu1 %v2345_v18 }
 0x16e   :  { %1902 = vmatmul.mubr.msk.f32.vlgmr.msra.gmra.mrb[4].mxu1 %vm366_vm0, %v2960_v25 }
 0x16f   :  { %2348 = vmatpush3.bf16.msra.mxu1 %v2345_v18  ;;  %1904 = vmatprep.mubr.msk.f32.mxu1 %vm366_vm0, %v2962_v26 }
 0x170   :  { %2350 = vmatprep.subr.bf16.mxu1 %v2349_v24 }
 0x172   :  { %1905 = vmatmul.mubr.msk.f32.gmra.mrb[6].mxu1 %vm366_vm0, %v2968_v27 }
 0x173   :  { %2352 = vmatpush3.bf16.msra.mxu1 %v2349_v24  ;;  %1953 = vmatprep.mubr.msk.f32.mxu1 %vm366_vm0, %v2970_v28 }
 0x174   :  { %2353 = vmatprep.subr.bf16.mxu1 %v2766_v31 }
 0x176   :  { %1954 = vmatmul.mubr.msk.f32.vlgmr.msra.gmra.mrb[8].mxu1 %vm366_vm0, %v2976_v29 }
 0x177   :  { %1956 = vmatprep.mubr.msk.f32.mxu1 %vm366_vm0, %v2978_v30  ;;  %2355 = vmatpush3.bf16.msra.mxu1 %v2989_v35 }
 0x178   :  { %2356 = vmatprep.subr.bf16.mxu1 %v2766_v31 }
 0x17a   :  { %1957 = vmatmul.mubr.msk.f32.gmra.mrb[10].mxu1 %vm366_vm0, %v2985_v32 }
 0x17b   :  { %2358 = vmatpush3.bf16.msra.mxu1 %v2993_v40  ;;  %1991 = vmatprep.mubr.msk.f32.mxu1 %vm2767_vm1, %v2768_v0 }
 0x17c   :  { %2359 = vmatprep.subr.bf16.mxu1 %v2766_v31 }
 0x17f   :  { %2361 = vmatpush3.bf16.msra.mxu1 %v2997_v45 }
 0x180   :  { %2362 = vmatprep.subr.bf16.mxu1 %v2766_v31 }
 0x182   :  { %v1941_v36 = vpop.f32.mrb[4].mxu0 }
 0x183   :  { %v530_v37 = vpop.f32.mrb[5].mxu0  ;;  %2364 = vmatpush3.bf16.msra.mxu1 %v3001_v48 }
 0x184   :  { %2365 = vmatprep.subr.bf16.mxu1 %v2766_v31 }
 0x186   :  { %v1944_v41 = vpop.f32.mrb[6].mxu0 }
 0x187   :  { %v540_v42 = vpop.f32.mrb[7].mxu0  ;;  %2367 = vmatpush3.bf16.msra.mxu1 %v3005_v51 }
 0x188   :  { %2368 = vmatprep.subr.bf16.mxu1 %v2766_v31 }
 0x18b   :  { %2370 = vmatpush3.bf16.msra.mxu1 %v3009_v56 }
 0x18c   :  { %2371 = vmatprep.subr.bf16.mxu1 %v2766_v31 }
 0x18f   :  { %2373 = vmatpush3.bf16.msra.mxu1 %v3013_v60 }
 0x190   :  { %2374 = vmatprep.subr.bf16.mxu1 %v2766_v31 }
 0x193   :  { %2376 = vmatpush3.bf16.msra.mxu1 %v3017_v63 }
 0x194   :  { %2377 = vmatprep.subr.bf16.mxu1 %v2766_v31 }
 0x241   :  { %v1903_v1 = vpop.f32.mrb[4].mxu1 }
 0x242   :  { %v536_v2 = vadd.f32 %v1941_v36, %v1903_v1  ;;  %v445_v3 = vpop.f32.mrb[5].mxu1  ;;  %v2433_v1 = vpack.c.bf16 %v980_v62, %v979_v58  ;;  %v874_v58 = vld [vmem:[#allocation7 + $0x70] sm:$0xff] }
 0x243   :  { %v531_v4 = vadd.f32 %v530_v37, %v445_v3  ;;  %v863_v3 = vld [vmem:[#allocation7 + $0x18] sm:$0xff] }
 0x245   :  { %v1906_v5 = vpop.f32.mrb[6].mxu1 }
 0x246   :  { %v546_v6 = vadd.f32 %v1944_v41, %v1906_v5  ;;  %v455_v7 = vpop.f32.mrb[7].mxu1 }
 0x247   :  { %v541_v8 = vadd.f32 %v540_v42, %v455_v7 }
 0x249   :  { %v1955_v9 = vpop.f32.mrb[8].mxu1 }
 0x24a   :  { %v3023_v10 = vadd.f32 %v1955_v9, %v536_v2  ;;  %v627_v11 = vpop.f32.mrb[9].mxu1  ;;  %v862_v2 = vld [vmem:[#allocation7 + $0x10] sm:$0xff]  ;;  %v865_v9 = vld [vmem:[#allocation7 + $0x28] sm:$0xff] }
 0x24b   :  { %v3025_v13 = vadd.f32 %v627_v11, %v531_v4  ;;  %v981_v4 = vld [vmem:[#allocation7 + $0x110] sm:$0xff]  ;;  %v2405_v5 = vpack.c.bf16 %v863_v3, %v862_v2  ;;  %v983_v11 = vld [vmem:[#allocation7 + $0x120] sm:$0xff]  ;;  %v994_v3 = vld [vmem:[#allocation7 + $0x178] sm:$0xff] }
 0x24c   :  { %v662_v33 = vmul.f32 %v3023_v10, %v3023_v10  ;;  %v993_v2 = vld [vmem:[#allocation7 + $0x170] sm:$0xff] }
 0x24d   :  { %v1958_v14 = vpop.f32.mrb[10].mxu1  ;;  %v652_v17 = vadd.f32 %v3023_v10, %v3025_v13  ;;  %v661_v34 = vmul.f32 %v3025_v13, %v3025_v13  ;;  %2406 = vmatprep.subr.bf16.mxu0 %v2405_v5 }
 0x24e   :  { %v3027_v15 = vadd.f32 %v1958_v14, %v546_v6  ;;  %v637_v16 = vpop.f32.mrb[11].mxu1  ;;  %v982_v6 = vld [vmem:[#allocation7 + $0x118] sm:$0xff]  ;;  %2408 = vmatpush3.bf16.msra.mxu0 %v2405_v5 }
 0x24f   :  { %v3031_v18 = vadd.f32 %v637_v16, %v541_v8  ;;  %v665_v39 = vadd.f32 %v662_v33, %v661_v34  ;;  %v2437_v7 = vpack.c.bf16 %v982_v6, %v981_v4  ;;  %v864_v8 = vld [vmem:[#allocation7 + $0x20] sm:$0xff]  ;;  %v984_v16 = vld [vmem:[#allocation7 + $0x128] sm:$0xff]  ;;  %v2461_v4 = vpack.c.bf16 %v994_v3, %v993_v2 }
 0x250   :  { %v664_v42 = vmul.f32 %v3027_v15, %v3027_v15  ;;  %v2409_v14 = vpack.c.bf16 %v865_v9, %v864_v8  ;;  %v868_v33 = vld [vmem:[#allocation7 + $0x40] sm:$0xff]  ;;  %v869_v34 = vld [vmem:[#allocation7 + $0x48] sm:$0xff] }
 0x251   :  { %v653_v19 = vadd.f32 %v652_v17, %v3031_v18  ;;  %v663_v37 = vmul.f32 %v3031_v18, %v3031_v18  ;;  %v2441_v17 = vpack.c.bf16 %v984_v16, %v983_v11  ;;  %v818_v11 = vlaneseq }
 0x252   :  { %2410 = vmatprep.subr.bf16.mxu0 %v2409_v14 }
 0x253   :  { %v654_v20 = vadd.f32 %v653_v19, %v3027_v15  ;;  %v666_v41 = vadd.f32 %v665_v39, %v663_v37  ;;  %2412 = vmatpush3.bf16.msra.mxu0 %v2409_v14  ;;  %v866_v19 = vld [vmem:[#allocation7 + $0x30] sm:$0xff]  ;;  %v2417_v37 = vpack.c.bf16 %v869_v34, %v868_v33 }
 0x255   :  { %v655_v21 = vrot.slane %v654_v20, 4  ;;  %v667_v43 = vadd.f32 %v666_v41, %v664_v42  ;;  %v870_v41 = vld [vmem:[#allocation7 + $0x50] sm:$0xff]  ;;  %v871_v42 = vld [vmem:[#allocation7 + $0x58] sm:$0xff] }
 0x257   :  { %v656_v22 = vadd.f32 %v655_v21, %v654_v20  ;;  %v668_v44 = vrot.slane %v667_v43, 4  ;;  %v867_v20 = vld [vmem:[#allocation7 + $0x38] sm:$0xff]  ;;  %v985_v21 = vld [vmem:[#allocation7 + $0x130] sm:$0xff] }
 0x259   :  { %v657_v23 = vrot.slane %v656_v22, 2  ;;  %v669_v46 = vadd.f32 %v668_v44, %v667_v43  ;;  %v989_v43 = vld [vmem:[#allocation7 + $0x150] sm:$0xff]  ;;  %v2421_v44 = vpack.c.bf16 %v871_v42, %v870_v41 }
 0x25b   :  { %v658_v24 = vadd.f32 %v657_v23, %v656_v22  ;;  %v670_v47 = vrot.slane %v669_v46, 2  ;;  %v2413_v22 = vpack.c.bf16 %v867_v20, %v866_v19  ;;  %v986_v23 = vld [vmem:[#allocation7 + $0x138] sm:$0xff]  ;;  %v819_v19 = vshrl.u32 %v818_v11, 7 }
 0x25d   :  { %v659_v36 = vrot.slane %v658_v24, 1  ;;  %v671_v49 = vadd.f32 %v670_v47, %v669_v46  ;;  %2414 = vmatprep.subr.bf16.mxu0 %v2413_v22  ;;  %v990_v46 = vld [vmem:[#allocation7 + $0x158] sm:$0xff] }
 0x25e   :  { %2416 = vmatpush3.bf16.msra.mxu0 %v2413_v22  ;;  %v2453_v47 = vpack.c.bf16 %v990_v46, %v989_v43 }
 0x25f   :  { %v660_v38 = vadd.f32 %v659_v36, %v658_v24  ;;  %v672_v50 = vrot.slane %v671_v49, 1  ;;  %v2445_v24 = vpack.c.bf16 %v986_v23, %v985_v21  ;;  %v987_v36 = vld [vmem:[#allocation7 + $0x140] sm:$0xff]  ;;  %2418 = vmatprep.subr.bf16.mxu0 %v2417_v37  ;;  %v3061_v21 = vsub.s32 0, %v819_v19  ;;  %v965_v19 = vld [vmem:[#allocation7 + $0x98] sm:$0xff] }
 0x261   :  { %1992 = vmatmul.mubr.f32.vlgmr.msra.gmra.mrb[12].mxu1 %v660_v38  ;;  %v673_v52 = vadd.f32 %v672_v50, %v671_v49  ;;  %v988_v38 = vld [vmem:[#allocation7 + $0x148] sm:$0xff]  ;;  %v872_v49 = vld [vmem:[#allocation7 + $0x60] sm:$0xff] }
 0x262   :  { %2379 = vmatpush3.bf16.msra.mxu1 %v2989_v35  ;;  %2026 = vmatprep.mubr.msk.f32.mxu1 %vm2767_vm1, %v2768_v0  ;;  %v2449_v39 = vpack.c.bf16 %v988_v38, %v987_v36  ;;  %v873_v50 = vld [vmem:[#allocation7 + $0x68] sm:$0xff]  ;;  %v1585_v38 = vld [vmem:[%s3178_s6] ss:$0 sm:$0xff] }
 0x263   :  { %2380 = vmatprep.subr.bf16.mxu1 %v2766_v31  ;;  %2420 = vmatpush3.bf16.msra.mxu0 %v2417_v37  ;;  %v2425_v53 = vpack.c.bf16 %v873_v50, %v872_v49 }
 0x264   :  { %2422 = vmatprep.subr.bf16.mxu0 %v2421_v44 }
 0x266   :  { %2382 = vmatpush3.bf16.msra.mxu1 %v2993_v40 }
 0x267   :  { %2383 = vmatprep.subr.bf16.mxu1 %v2766_v31  ;;  %2424 = vmatpush3.bf16.msra.mxu0 %v2421_v44 }
 0x268   :  { %2426 = vmatprep.subr.bf16.mxu0 %v2425_v53 }
 0x26a   :  { %2385 = vmatpush3.bf16.msra.mxu1 %v2997_v45 }
 0x26b   :  { %2386 = vmatprep.subr.bf16.mxu1 %v2766_v31  ;;  %2428 = vmatpush3.bf16.msra.mxu0 %v2425_v53 }
 0x26e   :  { %2388 = vmatpush3.bf16.msra.mxu1 %v3001_v48 }
 0x26f   :  { %2389 = vmatprep.subr.bf16.mxu1 %v2766_v31 }
 0x272   :  { %2391 = vmatpush3.bf16.msra.mxu1 %v3005_v51 }
 0x273   :  { %2392 = vmatprep.subr.bf16.mxu1 %v2766_v31 }
 0x276   :  { %2394 = vmatpush3.bf16.msra.mxu1 %v3009_v56 }
 0x277   :  { %2395 = vmatprep.subr.bf16.mxu1 %v2766_v31 }
 0x27a   :  { %2397 = vmatpush3.bf16.msra.mxu1 %v3013_v60 }
 0x27b   :  { %2398 = vmatprep.subr.bf16.mxu1 %v2766_v31 }
 0x27e   :  { %2400 = vmatpush3.bf16.msra.mxu1 %v3017_v63 }
 0x27f   :  { %2434 = vmatprep.subr.bf16.mxu1 %v2433_v1 }
 0x281   :  { %2027 = vmatmul.mubr.f32.vlgmr.msra.gmra.mrb[14].mxu1 %v673_v52  ;;  %v991_v52 = vld [vmem:[#allocation7 + $0x160] sm:$0xff] }
 0x282   :  { %2436 = vmatpush3.bf16.msra.mxu1 %v2433_v1  ;;  %v2457_v62 = vpack.c.bf16 %v992_v57, %v991_v52  ;;  %v2429_v1 = vpack.c.bf16 %v875_v61, %v874_v58 }
 0x283   :  { %2438 = vmatprep.subr.bf16.mxu1 %v2437_v7 }
 0x284   :  { %2430 = vmatprep.subr.bf16.mxu0 %v2429_v1 }
 0x285   :  { %2432 = vmatpush3.bf16.msra.mxu0 %v2429_v1 }
 0x286   :  { %2440 = vmatpush3.bf16.msra.mxu1 %v2437_v7 }
 0x287   :  { %2442 = vmatprep.subr.bf16.mxu1 %v2441_v17 }
 0x28a   :  { %2444 = vmatpush3.bf16.msra.mxu1 %v2441_v17 }
 0x28b   :  { %2446 = vmatprep.subr.bf16.mxu1 %v2445_v24 }
 0x28e   :  { %2448 = vmatpush3.bf16.msra.mxu1 %v2445_v24 }
 0x28f   :  { %2450 = vmatprep.subr.bf16.mxu1 %v2449_v39 }
 0x292   :  { %2452 = vmatpush3.bf16.msra.mxu1 %v2449_v39 }
 0x293   :  { %2454 = vmatprep.subr.bf16.mxu1 %v2453_v47 }
 0x296   :  { %2456 = vmatpush3.bf16.msra.mxu1 %v2453_v47 }
 0x297   :  { %2458 = vmatprep.subr.bf16.mxu1 %v2457_v62 }
 0x29a   :  { %2460 = vmatpush3.bf16.msra.mxu1 %v2457_v62 }
 0x29b   :  { %2462 = vmatprep.subr.bf16.mxu1 %v2461_v4 }
 0x29e   :  { %2464 = vmatpush3.bf16.msra.mxu1 %v2461_v4  ;;  %v962_v4 = vld [vmem:[#allocation7 + $0x80] sm:$0xff] }
 0x29f   :  { %2513 = vmatprep.subr.bf16.mxu1 %v2766_v31 }
 0x334   :  { %v740_v5 = vpop.f32.mrb[12].mxu1 }
 0x335   :  { %v1993_v6 = vpop.f32.mrb[13].mxu1  ;;  %v744_v7 = vmul.f32 0.001953125, %v740_v5  ;;  %v963_v5 = vld [vmem:[#allocation7 + $0x88] sm:$0xff] }
 0x337   :  { %v816_v9 = vmul.f32 %v744_v7, %v744_v7  ;;  %v821_v22 = vrot.slane %v744_v7, %v3061_v21 }
 0x339   :  { %v823_v24 = vsub.f32 %v3023_v10, %v821_v22  ;;  %v822_v34 = vsub.f32 %v3025_v13, %v821_v22  ;;  %v824_v36 = vsub.f32 %v3031_v18, %v821_v22  ;;  %v825_v37 = vsub.f32 %v3027_v15, %v821_v22  ;;  %v1586_v10 = vld [vmem:[%s3179_s7] ss:$0 sm:$0xff] }
 0x33a   :  { %v966_v22 = vld [vmem:[#allocation7 + $0xa0] sm:$0xff] }
 0x354   :  { %v811_v8 = vpop.f32.mrb[14].mxu1 }
 0x355   :  { %v815_v14 = vmul.f32 0.001953125, %v811_v8  ;;  %v2028_v16 = vpop.f32.mrb[15].mxu1 }
 0x356   :  { %v2473_v16 = vpack.c.bf16 %v963_v5, %v962_v4 }
 0x357   :  { %v817_v17 = vsub.f32 %v815_v14, %v816_v9 }
 0x359   :  { %v826_v20 = vadd.f32 1e-05, %v817_v17  ;;  %v964_v17 = vld [vmem:[#allocation7 + $0x90] sm:$0xff] }
 0x35b   :  { %2589 = vrsqrt.f32 %v826_v20  ;;  %v2477_v20 = vpack.c.bf16 %v965_v19, %v964_v17 }
 0x365   :  { %v2590_v23 = vpop.eup %2589 }
 0x366   :  { %v831_v33 = vrot.slane %v2590_v23, %v3061_v21  ;;  %v967_v23 = vld [vmem:[#allocation7 + $0xa8] sm:$0xff] }
 0x368   :  { %v832_v39 = vmul.f32 %v831_v33, %v822_v34  ;;  %v833_v41 = vmul.f32 %v831_v33, %v823_v24  ;;  %v834_v42 = vmul.f32 %v831_v33, %v824_v36  ;;  %v835_v43 = vmul.f32 %v831_v33, %v825_v37  ;;  %v968_v33 = vld [vmem:[#allocation7 + $0xb0] sm:$0xff]  ;;  %v969_v34 = vld [vmem:[#allocation7 + $0xb8] sm:$0xff]  ;;  %v970_v37 = vld [vmem:[#allocation7 + $0xc0] sm:$0xff] }
 0x369   :  { %v2481_v24 = vpack.c.bf16 %v967_v23, %v966_v22  ;;  %v2485_v36 = vpack.c.bf16 %v969_v34, %v968_v33  ;;  %v1595_v22 = vld [vmem:[%s3180_s8] ss:$0 sm:$0xff]  ;;  %s2726_s8 = scalar_lea.vmem %s1563_s3, 512 }
 0x36a   :  { %v842_v44 = vmul.f32 %v1585_v38, %v832_v39  ;;  %v843_v46 = vmul.f32 %v1585_v38, %v833_v41  ;;  %v844_v47 = vmul.f32 %v1585_v38, %v834_v42  ;;  %v845_v13 = vmul.f32 %v1585_v38, %v835_v43  ;;  %v971_v38 = vld [vmem:[#allocation7 + $0xc8] sm:$0xff]  ;;  %v972_v39 = vld [vmem:[#allocation7 + $0xd0] sm:$0xff]  ;;  %v973_v41 = vld [vmem:[#allocation7 + $0xd8] sm:$0xff]  ;;  %p2727_p6 = scmp.ne.s32.totalorder %s1563_s3, %s2726_s8  ;;  %p2732_p8 = scmp.lt.s32.totalorder %s2726_s8, %s2726_s8 }
 0x36b   :  { %v974_v42 = vld [vmem:[#allocation7 + $0xe0] sm:$0xff]  ;;  %v975_v43 = vld [vmem:[#allocation7 + $0xe8] sm:$0xff] }
 0x36c   :  { %v852_v49 = vadd.f32 %v1586_v10, %v842_v44  ;;  %v853_v18 = vadd.f32 %v1586_v10, %v843_v46  ;;  %v854_v50 = vadd.f32 %v1586_v10, %v844_v47  ;;  %v855_v53 = vadd.f32 %v1586_v10, %v845_v13  ;;  %v976_v10 = vld [vmem:[#allocation7 + $0xf0] sm:$0xff]  ;;  %v977_v44 = vld [vmem:[#allocation7 + $0xf8] sm:$0xff]  ;;  %p2733_p9 = por %p2732_p8, %p2731_p7 }
 0x36d   :  { %v2501_v46 = vpack.c.bf16 %v977_v44, %v976_v10 }
 0x36e   :  { %v3075_v15 = vmax.f32 %v852_v49, 0.0  ;;  %v3077_v52 = vmax.f32 %v853_v18, 0.0  ;;  %v3081_v57 = vmax.f32 %v854_v50, 0.0  ;;  %v3087_v58 = vmax.f32 %v855_v53, 0.0  ;;  %p2734_p10 = pnand %p2733_p9, %p2727_p6 }
 0x370   :  { %2061 = vmatprep.mubr.f32.mxu0 %v3075_v15  ;;  %2099 = vmatprep.mubr.f32.mxu1 %v3075_v15 }
 0x371   :  { %2062 = vmatmul.mubr.f32.vlgmr.msra.gmra.mrb[8].mxu0 %v3077_v52  ;;  %2100 = vmatmul.mubr.f32.vlgmr.msra.gmra.mrb[16].mxu1 %v3077_v52 }
 0x372   :  { %2064 = vmatprep.mubr.f32.mxu0 %v3081_v57  ;;  %2102 = vmatprep.mubr.f32.mxu1 %v3081_v57 }
 0x373   :  { %2515 = vmatpush3.bf16.msra.mxu1 %v2989_v35 }
 0x374   :  { %2516 = vmatprep.subr.bf16.mxu1 %v2766_v31 }
 0x375   :  { %2065 = vmatmul.mubr.f32.gmra.mrb[10].mxu0 %v3087_v58  ;;  %2103 = vmatmul.mubr.f32.gmra.mrb[18].mxu1 %v3087_v58 }
 0x376   :  { %2113 = vmatprep.mubr.msk.f32.mxu0 %vm366_vm0, %v2953_v12  ;;  %2203 = vmatprep.mubr.msk.f32.mxu1 %vm2767_vm1, %v2768_v0 }
 0x377   :  { %2518 = vmatpush3.bf16.msra.mxu1 %v2993_v40 }
 0x378   :  { %2519 = vmatprep.subr.bf16.mxu1 %v2766_v31 }
 0x37b   :  { %2521 = vmatpush3.bf16.msra.mxu1 %v2997_v45 }
 0x37c   :  { %2522 = vmatprep.subr.bf16.mxu1 %v2766_v31 }
 0x37f   :  { %2524 = vmatpush3.bf16.msra.mxu1 %v3001_v48 }
 0x380   :  { %2525 = vmatprep.subr.bf16.mxu1 %v2766_v31 }
 0x383   :  { %2527 = vmatpush3.bf16.msra.mxu1 %v3005_v51 }
 0x384   :  { %2528 = vmatprep.subr.bf16.mxu1 %v2766_v31 }
 0x387   :  { %2530 = vmatpush3.bf16.msra.mxu1 %v3009_v56 }
 0x388   :  { %2531 = vmatprep.subr.bf16.mxu1 %v2766_v31 }
 0x38b   :  { %2533 = vmatpush3.bf16.msra.mxu1 %v3013_v60 }
 0x38c   :  { %2534 = vmatprep.subr.bf16.mxu1 %v2766_v31 }
 0x38f   :  { %2536 = vmatpush3.bf16.msra.mxu1 %v3017_v63 }
 0x444   :  { %v2063_v12 = vpop.f32.mrb[8].mxu0  ;;  %v2101_v61 = vpop.f32.mrb[16].mxu1 }
 0x445   :  { %v942_v62 = vpop.f32.mrb[9].mxu0  ;;  %v1061_v1 = vpop.f32.mrb[17].mxu1 }
 0x446   :  { %v2465_v2 = vpack.c.bf16 %v2063_v12, %v942_v62  ;;  %v2505_v3 = vpack.c.bf16 %v2101_v61, %v1061_v1 }
 0x448   :  { %v2066_v6 = vpop.f32.mrb[10].mxu0  ;;  %v2104_v7 = vpop.f32.mrb[18].mxu1  ;;  %2466 = vmatprep.subr.bf16.mxu0 %v2465_v2 }
 0x449   :  { %v952_v8 = vpop.f32.mrb[11].mxu0  ;;  %v1071_v9 = vpop.f32.mrb[19].mxu1  ;;  %2468 = vmatpush3.bf16.msra.mxu0 %v2465_v2 }
 0x44a   :  { %v2469_v11 = vpack.c.bf16 %v2066_v6, %v952_v8  ;;  %v2509_v14 = vpack.c.bf16 %v2104_v7, %v1071_v9 }
 0x44c   :  { %2470 = vmatprep.subr.bf16.mxu0 %v2469_v11 }
 0x44d   :  { %2472 = vmatpush3.bf16.msra.mxu0 %v2469_v11 }
 0x44e   :  { %2474 = vmatprep.subr.bf16.mxu0 %v2473_v16 }
 0x450   :  { %2114 = vmatmul.mubr.msk.f32.vlgmr.msra.gmra.mrb[12].mxu0 %vm366_vm0, %v2960_v25  ;;  %v2489_v25 = vpack.c.bf16 %v971_v38, %v970_v37 }
 0x451   :  { %2476 = vmatpush3.bf16.msra.mxu0 %v2473_v16  ;;  %2116 = vmatprep.mubr.msk.f32.mxu0 %vm366_vm0, %v2962_v26  ;;  %v2493_v26 = vpack.c.bf16 %v973_v41, %v972_v39 }
 0x452   :  { %2478 = vmatprep.subr.bf16.mxu0 %v2477_v20 }
 0x454   :  { %2117 = vmatmul.mubr.msk.f32.gmra.mrb[14].mxu0 %vm366_vm0, %v2968_v27  ;;  %v2497_v27 = vpack.c.bf16 %v975_v43, %v974_v42  ;;  %v2593_v43 = vld [vmem:[#allocation2] sm:$0xff] }
 0x455   :  { %2480 = vmatpush3.bf16.msra.mxu0 %v2477_v20  ;;  %2151 = vmatprep.mubr.f32.mxu0 %v3075_v15 }
 0x456   :  { %2482 = vmatprep.subr.bf16.mxu0 %v2481_v24 }
 0x459   :  { %2484 = vmatpush3.bf16.msra.mxu0 %v2481_v24 }
 0x45a   :  { %2486 = vmatprep.subr.bf16.mxu0 %v2485_v36 }
 0x45d   :  { %2488 = vmatpush3.bf16.msra.mxu0 %v2485_v36  ;;  %v1596_v36 = vld [vmem:[%s3181_s9] ss:$0 sm:$0xff] }
 0x45e   :  { %2490 = vmatprep.subr.bf16.mxu0 %v2489_v25 }
 0x461   :  { %2492 = vmatpush3.bf16.msra.mxu0 %v2489_v25 }
 0x462   :  { %2494 = vmatprep.subr.bf16.mxu0 %v2493_v26 }
 0x465   :  { %2496 = vmatpush3.bf16.msra.mxu0 %v2493_v26 }
 0x466   :  { %2498 = vmatprep.subr.bf16.mxu0 %v2497_v27 }
 0x469   :  { %2500 = vmatpush3.bf16.msra.mxu0 %v2497_v27 }
 0x46a   :  { %2502 = vmatprep.subr.bf16.mxu0 %v2501_v46 }
 0x46d   :  { %2504 = vmatpush3.bf16.msra.mxu0 %v2501_v46 }
 0x46e   :  { %2506 = vmatprep.subr.bf16.mxu0 %v2505_v3 }
 0x470   :  { %2152 = vmatmul.mubr.f32.vlgmr.msra.gmra.mrb[12].mxu0 %v3077_v52 }
 0x471   :  { %2154 = vmatprep.mubr.f32.mxu0 %v3081_v57  ;;  %2508 = vmatpush3.bf16.msra.mxu0 %v2505_v3 }
 0x472   :  { %2510 = vmatprep.subr.bf16.mxu0 %v2509_v14 }
 0x474   :  { %2155 = vmatmul.mubr.f32.gmra.mrb[14].mxu0 %v3087_v58 }
 0x475   :  { %2512 = vmatpush3.bf16.msra.mxu0 %v2509_v14  ;;  %2165 = vmatprep.mubr.msk.f32.mxu0 %vm366_vm0, %v2970_v28 }
 0x476   :  { %2537 = vmatprep.subr.bf16.mxu0 %v2766_v31 }
 0x478   :  { %2166 = vmatmul.mubr.msk.f32.vlgmr.msra.gmra.mrb[12].mxu0 %vm366_vm0, %v2976_v29 }
 0x479   :  { %2168 = vmatprep.mubr.msk.f32.mxu0 %vm366_vm0, %v2978_v30  ;;  %2539 = vmatpush3.bf16.msra.mxu0 %v2989_v35 }
 0x47a   :  { %2540 = vmatprep.subr.bf16.mxu0 %v2766_v31 }
 0x47c   :  { %2169 = vmatmul.mubr.msk.f32.gmra.mrb[14].mxu0 %vm366_vm0, %v2985_v32 }
 0x47d   :  { %2542 = vmatpush3.bf16.msra.mxu0 %v2993_v40  ;;  %2238 = vmatprep.mubr.msk.f32.mxu0 %vm2767_vm1, %v2768_v0 }
 0x47e   :  { %2543 = vmatprep.subr.bf16.mxu0 %v2766_v31 }
 0x481   :  { %2545 = vmatpush3.bf16.msra.mxu0 %v2997_v45 }
 0x482   :  { %2546 = vmatprep.subr.bf16.mxu0 %v2766_v31 }
 0x485   :  { %2548 = vmatpush3.bf16.msra.mxu0 %v3001_v48 }
 0x486   :  { %2549 = vmatprep.subr.bf16.mxu0 %v2766_v31 }
 0x489   :  { %2551 = vmatpush3.bf16.msra.mxu0 %v3005_v51 }
 0x48a   :  { %2552 = vmatprep.subr.bf16.mxu0 %v2766_v31 }
 0x48d   :  { %2554 = vmatpush3.bf16.msra.mxu0 %v3009_v56 }
 0x48e   :  { %2555 = vmatprep.subr.bf16.mxu0 %v2766_v31 }
 0x491   :  { %2557 = vmatpush3.bf16.msra.mxu0 %v3013_v60 }
 0x492   :  { %2558 = vmatprep.subr.bf16.mxu0 %v2766_v31 }
 0x495   :  { %2560 = vmatpush3.bf16.msra.mxu0 %v3017_v63 }
 0x54b   :  { %v2167_v28 = vpop.f32.mrb[12].mxu0 }
 0x54c   :  { %v1351_v29 = vmul.f32 %v2167_v28, %v2167_v28  ;;  %v1316_v30 = vpop.f32.mrb[13].mxu0 }
 0x54d   :  { %v1341_v32 = vadd.f32 %v2167_v28, %v1316_v30  ;;  %v1350_v35 = vmul.f32 %v1316_v30, %v1316_v30 }
 0x54f   :  { %v1354_v40 = vadd.f32 %v1351_v29, %v1350_v35  ;;  %v2170_v45 = vpop.f32.mrb[14].mxu0 }
 0x550   :  { %v1326_v48 = vpop.f32.mrb[15].mxu0  ;;  %v1353_v47 = vmul.f32 %v2170_v45, %v2170_v45 }
 0x551   :  { %v1342_v51 = vadd.f32 %v1341_v32, %v1326_v48  ;;  %v1352_v0 = vmul.f32 %v1326_v48, %v1326_v48 }
 0x553   :  { %v1343_v56 = vadd.f32 %v2170_v45, %v1342_v51  ;;  %v1355_v13 = vadd.f32 %v1354_v40, %v1352_v0 }
 0x555   :  { %v1344_v49 = vrot.slane %v1343_v56, 4  ;;  %v1356_v18 = vadd.f32 %v1355_v13, %v1353_v47 }
 0x557   :  { %v1345_v60 = vadd.f32 %v1344_v49, %v1343_v56  ;;  %v1357_v50 = vrot.slane %v1356_v18, 4 }
 0x559   :  { %v1346_v31 = vrot.slane %v1345_v60, 2  ;;  %v1358_v15 = vadd.f32 %v1357_v50, %v1356_v18 }
 0x55b   :  { %v1347_v63 = vadd.f32 %v1346_v31, %v1345_v60  ;;  %v1359_v52 = vrot.slane %v1358_v15, 2 }
 0x55d   :  { %v1348_v53 = vrot.slane %v1347_v63, 1  ;;  %v1360_v57 = vadd.f32 %v1359_v52, %v1358_v15 }
 0x55f   :  { %v1349_v58 = vadd.f32 %v1348_v53, %v1347_v63  ;;  %v1361_v12 = vrot.slane %v1360_v57, 1 }
 0x561   :  { %2204 = vmatmul.mubr.f32.vlgmr.msra.gmra.mrb[20].mxu1 %v1349_v58  ;;  %v1362_v61 = vadd.f32 %v1361_v12, %v1360_v57 }
 0x563   :  { %2239 = vmatmul.mubr.f32.vlgmr.msra.gmra.mrb[16].mxu0 %v1362_v61 }
 0x634   :  { %v1429_v62 = vpop.f32.mrb[20].mxu1 }
 0x635   :  { %v1433_v1 = vmul.f32 0.001953125, %v1429_v62  ;;  %v2205_v2 = vpop.f32.mrb[21].mxu1 }
 0x636   :  { %v1500_v3 = vpop.f32.mrb[16].mxu0 }
 0x637   :  { %v1505_v4 = vmul.f32 %v1433_v1, %v1433_v1  ;;  %v1510_v5 = vrot.slane %v1433_v1, %v3061_v21  ;;  %v1504_v6 = vmul.f32 0.001953125, %v1500_v3  ;;  %v2240_v7 = vpop.f32.mrb[17].mxu0 }
 0x639   :  { %v1511_v8 = vsub.f32 %v1316_v30, %v1510_v5  ;;  %v1512_v9 = vsub.f32 %v2167_v28, %v1510_v5  ;;  %v1513_v11 = vsub.f32 %v1326_v48, %v1510_v5  ;;  %v1514_v14 = vsub.f32 %v2170_v45, %v1510_v5 }
 0x63a   :  { %v1506_v16 = vsub.f32 %v1504_v6, %v1505_v4 }
 0x63c   :  { %v1515_v17 = vadd.f32 1e-05, %v1506_v16 }
 0x63e   :  { %2591 = vrsqrt.f32 %v1515_v17 }
 0x648   :  { %v2592_v19 = vpop.eup %2591 }
 0x649   :  { %v1520_v20 = vrot.slane %v2592_v19, %v3061_v21 }
 0x64b   :  { %v1521_v23 = vmul.f32 %v1520_v20, %v1511_v8  ;;  %v1522_v24 = vmul.f32 %v1520_v20, %v1512_v9  ;;  %v1523_v33 = vmul.f32 %v1520_v20, %v1513_v11  ;;  %v1524_v34 = vmul.f32 %v1520_v20, %v1514_v14 }
 0x64d   :  { %v1531_v37 = vmul.f32 %v1595_v22, %v1521_v23  ;;  %v1532_v38 = vmul.f32 %v1595_v22, %v1522_v24  ;;  %v1533_v25 = vmul.f32 %v1595_v22, %v1523_v33  ;;  %v1534_v39 = vmul.f32 %v1595_v22, %v1524_v34 }
 0x64f   :  { %v1541_v41 = vadd.f32 %v1596_v36, %v1531_v37  ;;  %v1542_v26 = vadd.f32 %v1596_v36, %v1532_v38  ;;  %v1543_v42 = vadd.f32 %v1596_v36, %v1533_v25  ;;  %v1544_v21 = vadd.f32 %v1596_v36, %v1534_v39 }
 0x651   :  { %v1545_v27 = vadd.f32 %v2593_v43, %v1541_v41  ;;  %v1546_v10 = vadd.f32 %v1542_v26, %v2940_v54  ;;  %v1547_v44 = vadd.f32 %v1543_v42, %v2942_v55  ;;  %v1548_v46 = vadd.f32 %v1544_v21, %v2946_v59 }
 0x653   :  { %v1549_v28 = vmax.f32 %v1545_v27, 0.0  ;;  %v1550_v29 = vmax.f32 %v1546_v10, 0.0  ;;  %v1551_v30 = vmax.f32 %v1547_v44, 0.0  ;;  %v1552_v32 = vmax.f32 %v1548_v46, 0.0 }
 0x655   :  { %1553 = vst [vmem:[#allocation13] sm:$0xff] %v1549_v28  ;;  %1554 = vst [vmem:[#allocation13 + $0x8] sm:$0xff] %v1550_v29 }
 0x656   :  { %1555 = vst [vmem:[#allocation13 + $0x10] sm:$0xff] %v1551_v30  ;;  %1556 = vst [vmem:[#allocation13 + $0x18] sm:$0xff] %v1552_v32 }
 0x657   :  { %2737 = shalt.err (!%p2734_p10)
}
 0x658   :  { %s2738_s12 = scalar_lea.hbm %s3182_s10, 512 }
 0x659   :  { %p2739_p11 = scmp.ne.s32.totalorder %s3182_s10, %s2738_s12  ;;  %p2742_p12 = scmp.lt.u32.totalorder %s2738_s12, %s3182_s10 }
 0x65b   :  { %p2744_p13 = pnand %p2742_p12, %p2739_p11 }
 0x65d   :  { %2747 = shalt.err (!%p2744_p13)
}
 0x65e   :  { %1568 = dma.vmem_to_hbm [thread:$0]  %s1563_s3, 512, %s3182_s10, [#allocation4], %s2760_s25, %s2760_s25, %s2761_s26  }
 0x65f   :  { %2756 = dma.done.wait [#allocation4], 512  }
 0x660   :  { %2757 = vsyncadd [#allocation4], 4294966784 }
 0x661   :  { %1572 = vsyncpa [#allocation3], 1 }
 0x662   :  { %1573 = vsyncpa [#allocation6], 1 }
 0x663   :  { %1574 = vsyncpa [#allocation9], 1 }
 0x664   :  { %1575 = vsyncpa [#allocation12], 1 }
 0x665   :  { %1576 = vsyncpa [#allocation4], 1 }

</bundles_post_ra>
